<compile_context>
chip_gen: v6e
topology: v6e:2x2x1
jax: 0.10.0
libtpu: 0.0.40
codegen_flags: <defaults>
</compile_context>

<pallas_src>
import math

import jax
import jax.numpy as jnp
from jax.experimental import pallas as pl
from jax.experimental.pallas import tpu as pltpu


# ----------------------------- tiling constants -----------------------------

_TILE_ROWS = 512            # sublane tile: multiple of 8 (f32)
_TILE_LANES = 1024          # lane tile: multiple of 128 -> unmasked stores
_SMALL_FAST_PATH_BYTES = 256 * 1024   # below this, plain XLA multiply is cheaper


# ----------------------------- Pallas kernels -----------------------------

def _mul_kernel(x_ref, m_ref, o_ref):
    # x: (TR, TF); m: (TR, 1) (channel/row broadcast) or (TR, TF) (elementwise)
    o_ref[...] = x_ref[...] * m_ref[...]


def _fpgm_dist_kernel(w_ref, med_ref, o_ref, acc_ref):
    # Tiled reduction over the feature axis:
    #   w: (TC, TF), med: (1, TF) -> acc (TC, 1) partial sum of (w - med)^2,
    #   sqrt + store only on the last feature tile.
    @pl.when(pl.program_id(1) == 0)
    def _init():
        acc_ref[...] = jnp.zeros_like(acc_ref)

    diff = w_ref[...] - med_ref[...]
    acc_ref[...] += jnp.sum(diff * diff, axis=-1, keepdims=True)

    @pl.when(pl.program_id(1) == pl.num_programs(1) - 1)
    def _finalize():
        o_ref[...] = jnp.sqrt(acc_ref[...])


# ----------------------------- Pallas wrappers -----------------------------

def tiled_mask_multiply_2d(x2, m2):
    """x2: (R, F); m2: (R, 1) or (R, F) in x2.dtype -> x2 * m2 via a tiled Pallas call."""
    R, F = x2.shape
    TR = min(R, _TILE_ROWS)     # full extent if small, else multiple of 8
    TF = min(F, _TILE_LANES)    # full extent if small, else multiple of 128
    grid = (pl.cdiv(R, TR), pl.cdiv(F, TF))

    if m2.shape[1] == 1:
        m_spec = pl.BlockSpec((TR, 1), lambda i, j: (i, 0))
    else:
        m_spec = pl.BlockSpec((TR, TF), lambda i, j: (i, j))

    return pl.pallas_call(
        _mul_kernel,
        grid=grid,
        out_shape=jax.ShapeDtypeStruct((R, F), x2.dtype),
        in_specs=[pl.BlockSpec((TR, TF), lambda i, j: (i, j)), m_spec],
        out_specs=pl.BlockSpec((TR, TF), lambda i, j: (i, j)),
        compiler_params=pltpu.CompilerParams(
            dimension_semantics=("parallel", "parallel")),
    )(x2, m2)


def fpgm_channel_distances(w2d, median_row):
    """w2d: (C, F), median_row: (F,) -> (C,) per-channel L2 distance to the median row."""
    C, F = w2d.shape
    w2d = w2d.astype(jnp.float32)
    med = median_row.astype(jnp.float32)

    TC = min(C, _TILE_ROWS)
    if F <= _TILE_LANES:
        TF, Fp = F, F                       # full-extent lane dim, no padding needed
    else:
        TF = _TILE_LANES
        Fp = ((F + TF - 1) // TF) * TF      # zero-pad so the reduction never sees garbage
        if Fp != F:
            w2d = jnp.pad(w2d, ((0, 0), (0, Fp - F)))
            med = jnp.pad(med, (0, Fp - F))
    med2 = med.reshape(1, Fp)

    grid = (pl.cdiv(C, TC), Fp // TF)
    out = pl.pallas_call(
        _fpgm_dist_kernel,
        grid=grid,
        out_shape=jax.ShapeDtypeStruct((C, 1), jnp.float32),
        in_specs=[pl.BlockSpec((TC, TF), lambda i, k: (i, k)),
                  pl.BlockSpec((1, TF), lambda i, k: (0, k))],
        out_specs=pl.BlockSpec((TC, 1), lambda i, k: (i, 0)),
        scratch_shapes=[pltpu.VMEM((TC, 1), jnp.float32)],
        compiler_params=pltpu.CompilerParams(
            dimension_semantics=("parallel", "arbitrary")),
    )(w2d, med2)
    return out.reshape(C)


# ------------------------- Module re-implementation -------------------------

class IncrementalPruningParametrization:
    """JAX/Pallas port of torchmodelopt IncrementalPruningParametrization.

    The mask is built once at init (threshold selection in plain JAX; FPGM distances in
    Pallas).  The forward pass (X * mask, channel-broadcast for structured pruning) runs
    as a tiled Pallas kernel; tiny tensors fall back to a fused XLA multiply.
    """

    def __init__(self, net_weight, channel_pruning=False, pruning_ratio=0.6,
                 n2m_pruning=False, init_train_ep=5, binary_mask=False,
                 tao=1e-4, pruning_dim=0, depthwise=False,
                 min_pallas_bytes=_SMALL_FAST_PATH_BYTES, **kwargs):
        self.channel_pruning = channel_pruning
        self.pruning_ratio = pruning_ratio
        self.n2m_pruning = n2m_pruning
        self.init_train_ep = init_train_ep
        self.binary_mask = binary_mask
        self.tao = tao
        self.pruning_dim = pruning_dim
        self.fpgm_weights = True
        self.epoch_count = kwargs.get('epoch_count', 0)
        self.total_epochs = kwargs.get('total_epochs', 0)
        self.m = kwargs.get('m', None)
        self._min_pallas_bytes = min_pallas_bytes

        self.new_shape = list(range(net_weight.ndim))
        self.new_shape[0], self.new_shape[pruning_dim] = (
            self.new_shape[pruning_dim], self.new_shape[0])

        n = int(net_weight.size)
        if int(self.pruning_ratio * n) == 0 or net_weight.shape[pruning_dim] <= 32:
            if channel_pruning:
                mask = jnp.ones((net_weight.shape[pruning_dim],), jnp.float32)
            else:
                mask = jnp.ones_like(net_weight)
        elif depthwise and not channel_pruning:
            mask = jnp.ones_like(net_weight)
        else:
            mask = self.create_mask(net_weight)
        self.mask = mask

        # cache the 2-D mask layout for the weight shape/dtype seen at init
        self._mask2_cache = {}
        if net_weight.ndim >= 1:
            _ = self._get_mask2(tuple(net_weight.shape), net_weight.dtype)

    # ----------------------------- mask creation -----------------------------

    def create_mask(self, net_weight):
        if self.epoch_count <= self.init_train_ep:
            if self.channel_pruning:
                return jnp.ones((net_weight.shape[self.pruning_dim],), jnp.float32)
            return jnp.ones_like(net_weight)

        total_epochs_knee_point = (self.total_epochs - self.init_train_ep) * 2 // 3
        alpha_factor = 0.0

        if self.n2m_pruning:
            # TODO(synk): n:m group-wise top-k mask (data-dependent per-group top-k) has no
            # clean Pallas equivalent; not implemented in this synthetic script.
            return jnp.ones_like(net_weight)

        w = net_weight
        if self.channel_pruning:
            w = jnp.transpose(net_weight, self.new_shape)   # init-time only
            C = w.shape[0]
            w2d = w.reshape(C, -1).astype(jnp.float32)
            # torch.median(dim=0): lower median -> sorted index (C-1)//2
            srt = jnp.sort(w2d, axis=0)
            rough_median = srt[(C - 1) // 2]
            # FPGM per-channel L2 distance reduction in Pallas
            w = fpgm_channel_distances(w2d, rough_median)

        weight_abs = jnp.abs(w).astype(jnp.float32)
        prune_elements = (self.pruning_ratio * (self.epoch_count - self.init_train_ep)
                          / (total_epochs_knee_point - self.init_train_ep))
        n = int(weight_abs.size)
        keep_elem_k = int((1 - prune_elements) * n)
        keep_elem_k = max(1, min(keep_elem_k, n - 1))   # clamp: avoid wrap/clamp artifacts
        # threshold t = (min of top-k largest + max of bottom (n-k) smallest) / 2
        flat_desc = jnp.sort(weight_abs.reshape(-1))[::-1]
        t = (flat_desc[keep_elem_k - 1] + flat_desc[keep_elem_k]) / 2.0
        soft_mask = jnp.where(weight_abs >= t, 1.0, alpha_factor)
        return soft_mask.astype(jnp.float32)

    # --------------------------- 2-D layout helpers ---------------------------

    def _flatten_dims(self, shape):
        """For channel pruning along pruning_dim k: rows = prod(shape[:k+1]), cols = rest."""
        k = self.pruning_dim
        pre = math.prod(shape[:k]) if k > 0 else 1
        C = shape[k]
        post = math.prod(shape[k + 1:]) if k + 1 < len(shape) else 1
        return int(pre), int(C), int(pre * C), int(post)

    def _get_mask2(self, shape, dtype):
        """Cached 2-D mask matching the flattened view of an array of `shape`/`dtype`."""
        key = (tuple(shape), jnp.dtype(dtype).name)
        cached = self._mask2_cache.get(key)
        if cached is not None:
            return cached
        if self.channel_pruning:
            if len(shape) == 1:
                m2 = self.mask.astype(dtype).reshape(1, -1)
            else:
                pre, _, R, _ = self._flatten_dims(shape)
                # row r = (a, c) with r = a*C + c  ->  row mask = tile(mask, pre)
                m2 = jnp.tile(self.mask.astype(dtype), pre).reshape(R, 1)
        else:
            if len(shape) >= 2:
                R = shape[0]
                F = math.prod(shape) // R
            else:
                R, F = 1, math.prod(shape) if shape else 1
            m2 = self.mask.astype(dtype).reshape(R, F)
        self._mask2_cache[key] = m2
        return m2

    # --------------------------------- forward ---------------------------------

    def forward(self, X):
        shape = tuple(X.shape)
        if self.channel_pruning:
            if X.ndim == 1:
                x2 = X.reshape(1, -1)
            else:
                _, _, R, F = self._flatten_dims(shape)
                # no transpose needed: broadcast along pruning_dim folded into the
                # (R, 1) row mask over the contiguous (R, F) view of X.
                x2 = X.reshape(R, F)
        else:
            if X.ndim >= 2:
                R = shape[0]
                F = int(X.size) // R
            else:
                R, F = 1, int(X.size)
            x2 = X.reshape(R, F)

        m2 = self._get_mask2(shape, X.dtype)

        if int(X.size) * X.dtype.itemsize < self._min_pallas_bytes:
            out2 = x2 * m2                      # small-tensor fast path (XLA fuses)
        else:
            out2 = tiled_mask_multiply_2d(x2, m2)
        return out2.reshape(shape)

    def right_inverse(self, A):
        return A


# --------------------------------- demo ---------------------------------

if __name__ == "__main__":
    key = jax.random.PRNGKey(0)
    k1, k2, k3 = jax.random.split(key, 3)

    # 1) structured (channel) pruning, pruning_dim=0, OIHW conv weight (Cout > 32)
    w_conv = jax.random.normal(k1, (48, 16, 3, 3), dtype=jnp.float32)
    p_ch = IncrementalPruningParametrization(
        w_conv, channel_pruning=True, pruning_ratio=0.6, init_train_ep=5,
        epoch_count=10, total_epochs=30,
        min_pallas_bytes=0)  # force the Pallas path even for this small demo weight
    y_ch = jax.block_until_ready(p_ch.forward(w_conv))
    ref_ch = w_conv * p_ch.mask[:, None, None, None]
    assert y_ch.shape == w_conv.shape and y_ch.dtype == w_conv.dtype
    assert jnp.allclose(y_ch, ref_ch, atol=1e-6)

    # 2) structured pruning along pruning_dim=1 (transpose folded into the row-mask layout)
    w_t = jax.random.normal(k2, (16, 40, 3, 3), dtype=jnp.float32)
    p_d1 = IncrementalPruningParametrization(
        w_t, channel_pruning=True, pruning_ratio=0.6, init_train_ep=5,
        epoch_count=10, total_epochs=30, pruning_dim=1, min_pallas_bytes=0)
    y_d1 = jax.block_until_ready(p_d1.forward(w_t))
    ref_d1 = w_t * p_d1.mask[None, :, None, None]
    assert jnp.allclose(y_d1, ref_d1, atol=1e-6)

    # 3) unstructured pruning (elementwise mask, same shape as the weight)
    w_lin = jax.random.normal(k3, (64, 256), dtype=jnp.float32)
    p_un = IncrementalPruningParametrization(
        w_lin, channel_pruning=False, pruning_ratio=0.6, init_train_ep=5,
        epoch_count=10, total_epochs=30, min_pallas_bytes=0)
    y_un = jax.block_until_ready(p_un.forward(w_lin))
    ref_un = w_lin * p_un.mask
    assert jnp.allclose(y_un, ref_un, atol=1e-6)

    # 4) small-tensor fast path (default threshold) must match the Pallas path
    p_fast = IncrementalPruningParametrization(
        w_lin, channel_pruning=False, pruning_ratio=0.6, init_train_ep=5,
        epoch_count=10, total_epochs=30)  # default min_pallas_bytes -> plain XLA multiply
    y_fast = jax.block_until_ready(p_fast.forward(w_lin))
    assert jnp.allclose(y_fast, ref_un, atol=1e-6)

    print("KERNEL_OK")
</pallas_src>

<mosaic_0001>
module attributes {stable_mosaic.version = 11 : i64} {
  func.func @_fpgm_dist_kernel(%arg0: i32, %arg1: i32, %arg2: memref<48x144xf32, #tpu.memory_space<vmem>>, %arg3: memref<1x144xf32, #tpu.memory_space<vmem>>, %arg4: memref<48x1xf32, #tpu.memory_space<vmem>>, %arg5: memref<48x1xf32, #tpu.memory_space<vmem>>) attributes {dimension_semantics = [#tpu.dimension_semantics<parallel>, #tpu.dimension_semantics<arbitrary>], iteration_bounds = array<i64: 1, 1>, scalar_prefetch = 0 : i64, scratch_operands = 1 : i64, tpu.core_type = #tpu.core_type<tc>, window_params = [{transform_indices = @transform_0, window_bounds = array<i64: 48, 144>}, {transform_indices = @transform_1, window_bounds = array<i64: 1, 144>}, {transform_indices = @transform_2, window_bounds = array<i64: 48, 1>}]} {
    %c0_i32 = arith.constant 0 : i32
    %0 = arith.cmpi eq, %arg1, %c0_i32 : i32
    %1 = arith.extui %0 : i1 to i32
    %c0_i32_0 = arith.constant 0 : i32
    %2 = arith.cmpi ne, %1, %c0_i32_0 : i32
    scf.if %2 {
      %cst_10 = arith.constant 0.000000e+00 : f32
      %16 = vector.broadcast %cst_10 : f32 to vector<48x1xf32>
      %c0_11 = arith.constant 0 : index
      %c0_12 = arith.constant 0 : index
      %17 = vector.load %arg5[%c0_11, %c0_12] : memref<48x1xf32, #tpu.memory_space<vmem>>, vector<48x1xf32>
      tpu.vector_store %arg5[%c0_11, %c0_12], %16 {strides = array<i32>} : memref<48x1xf32, #tpu.memory_space<vmem>>, vector<48x1xf32>,
    } else {
    }
    %c0 = arith.constant 0 : index
    %c0_1 = arith.constant 0 : index
    %3 = vector.load %arg2[%c0, %c0_1] : memref<48x144xf32, #tpu.memory_space<vmem>>, vector<48x144xf32>
    %c0_2 = arith.constant 0 : index
    %c0_3 = arith.constant 0 : index
    %4 = vector.load %arg3[%c0_2, %c0_3] : memref<1x144xf32, #tpu.memory_space<vmem>>, vector<1x144xf32>
    %5 = vector.broadcast %4 : vector<1x144xf32> to vector<48x144xf32>
    %6 = arith.subf %3, %5 : vector<48x144xf32>
    %c0_4 = arith.constant 0 : index
    %c0_5 = arith.constant 0 : index
    %7 = vector.load %arg5[%c0_4, %c0_5] : memref<48x1xf32, #tpu.memory_space<vmem>>, vector<48x1xf32>
    %8 = arith.mulf %6, %6 : vector<48x144xf32>
    %cst = arith.constant dense<0.000000e+00> : vector<48xf32>
    %9 = vector.multi_reduction <add>, %8, %cst [1] : vector<48x144xf32> to vector<48xf32>
    %10 = vector.shape_cast %9 : vector<48xf32> to vector<48x1xf32>
    %11 = arith.addf %7, %10 : vector<48x1xf32>
    %c0_6 = arith.constant 0 : index
    %c0_7 = arith.constant 0 : index
    %12 = vector.load %arg5[%c0_6, %c0_7] : memref<48x1xf32, #tpu.memory_space<vmem>>, vector<48x1xf32>
    tpu.vector_store %arg5[%c0_6, %c0_7], %11 {strides = array<i32>} : memref<48x1xf32, #tpu.memory_space<vmem>>, vector<48x1xf32>,
    %c0_i32_8 = arith.constant 0 : i32
    %13 = arith.cmpi eq, %arg1, %c0_i32_8 : i32
    %14 = arith.extui %13 : i1 to i32
    %c0_i32_9 = arith.constant 0 : i32
    %15 = arith.cmpi ne, %14, %c0_i32_9 : i32
    scf.if %15 {
      %c0_10 = arith.constant 0 : index
      %c0_11 = arith.constant 0 : index
      %16 = vector.load %arg5[%c0_10, %c0_11] : memref<48x1xf32, #tpu.memory_space<vmem>>, vector<48x1xf32>
      %17 = math.sqrt %16 : vector<48x1xf32>
      %c0_12 = arith.constant 0 : index
      %c0_13 = arith.constant 0 : index
      %18 = vector.load %arg4[%c0_12, %c0_13] : memref<48x1xf32, #tpu.memory_space<vmem>>, vector<48x1xf32>
      tpu.vector_store %arg4[%c0_12, %c0_13], %17 {strides = array<i32>} : memref<48x1xf32, #tpu.memory_space<vmem>>, vector<48x1xf32>,
    } else {
    }
    return
  }
  func.func @transform_0(%arg0: i32, %arg1: i32) -> (i32, i32) {
    %c0_i32 = arith.constant 0 : i32
    return %arg0, %arg1 : i32, i32
  }
  func.func @transform_1(%arg0: i32, %arg1: i32) -> (i32, i32) {
    %c0_i32 = arith.constant 0 : i32
    %c0_i32_0 = arith.constant 0 : i32
    return %c0_i32, %arg1 : i32, i32
  }
  func.func @transform_2(%arg0: i32, %arg1: i32) -> (i32, i32) {
    %c0_i32 = arith.constant 0 : i32
    %c0_i32_0 = arith.constant 0 : i32
    return %arg0, %c0_i32 : i32, i32
  }
}

</mosaic_0001>

<bundles_post_ra>
// kernel: tpu_custom_call.1
= control target key start
LH: loop header
LB: loop body
LE: loop exit
PB: predicated region body
PF: predicated region fallthrough
CT: control target
= control target key end

     0   :  { %7 = vsyncpa [#allocation4], 0  ;;  %s332_s0 = inlined_call_operand.hbm [shape: f32[48,144], index: 0, kind: input, shape index: {}]   ;;  %s333_s1 = inlined_call_operand.hbm [shape: f32[1,144], index: 1, kind: input, shape index: {}]   ;;  %s334_s2 = inlined_call_operand.vmem [shape: f32[48,1], index: 2, kind: output, shape index: {}]  }
   0x1   :  { %8 = vsyncpa [#allocation6], 0  ;;  %s264_s9 = smov [#allocation3]  }
   0x2   :  { %s14_s10 = sshll.u32 %s264_s9, 4  ;;  %s15_s10 = int_to_ptr.vmem [resolvable:$true] %s14_s10 }
   0x3   :  { %s228_s11 = scalar_lea.vmem %s15_s10, 1536  ;;  %p233_p1 = scmp.lt.s32.totalorder %s15_s10, %s15_s10 }
   0x4   :  { %p229_p0 = scmp.ne.s32.totalorder %s15_s10, %s228_s11  ;;  %p234_p2 = scmp.lt.s32.totalorder %s228_s11, %s228_s11 }
   0x6   :  { %p235_p3 = por %p234_p2, %p233_p1 }
   0x8   :  { %p236_p4 = pnand %p235_p3, %p229_p0 }
   0xa   :  { %239 = shalt.err (!%p236_p4)
}
   0xb   :  { %s265_s12 = smov 256   ;;  %s266_s13 = smov 16  }
   0xc   :  { %20 = dma.hbm_to_vmem [thread:$0]  %s332_s0, 1536, %s15_s10, [#allocation4], %s265_s12, %s265_s12, %s266_s13  }
   0xd   :  { %s267_s16 = smov [#allocation5]  }
   0xe   :  { %s27_s17 = sshll.u32 %s267_s16, 4  ;;  %s28_s17 = int_to_ptr.vmem [resolvable:$true] %s27_s17 }
   0xf   :  { %s248_s18 = scalar_lea.vmem %s28_s17, 32  ;;  %p253_p6 = scmp.lt.s32.totalorder %s28_s17, %s28_s17 }
  0x10   :  { %p249_p5 = scmp.ne.s32.totalorder %s28_s17, %s248_s18  ;;  %p254_p7 = scmp.lt.s32.totalorder %s248_s18, %s248_s18 }
  0x12   :  { %p255_p8 = por %p254_p7, %p253_p6 }
  0x14   :  { %p256_p9 = pnand %p255_p8, %p249_p5 }
  0x16   :  { %259 = shalt.err (!%p256_p9)
}
  0x17   :  { %30 = dma.hbm_to_vmem [thread:$0]  %s333_s1, 32, %s28_s17, [#allocation6]  }
  0x18   :  { %260 = dma.done.wait [#allocation4], 1536  }
  0x19   :  { %261 = vsyncadd [#allocation4], 4294965760 }
  0x1a   :  { %262 = dma.done.wait [#allocation6], 32  }
  0x1b   :  { %263 = vsyncadd [#allocation6], 4294967264  ;;  %v62_v0 = vlaneseq  ;;  %vm41_vm0 = vcmask 7168   ;;  %v268_v1 = vmov 0.0   ;;  %v52_v5 = vld [vmem:[#allocation3 + $0x20] sm:$0xff]  ;;  %v53_v6 = vld [vmem:[#allocation3 + $0x28] sm:$0xff] }
  0x1c   :  { %44 = vst.msk [vmem:[#allocation2 + $0x10] sm:$0xff] %vm41_vm0, %v268_v1  ;;  %42 = vst.msk [vmem:[#allocation2] sm:$0xff] %vm41_vm0, %v268_v1  ;;  %v60_v7 = vld [vmem:[#allocation5] sm:$0x3]  ;;  %v49_v11 = vld [vmem:[#allocation3 + $0x8] sm:$0xff]  ;;  %vm102_vm1 = vcmask 130048  }
  0x1d   :  { %43 = vst.msk [vmem:[#allocation2 + $0x8] sm:$0xff] %vm41_vm0, %v268_v1  ;;  %45 = vst.msk [vmem:[#allocation2 + $0x18] sm:$0xff] %vm41_vm0, %v268_v1  ;;  %v63_v2 = vshrl.u32 %v62_v0, 7  ;;  %v48_v10 = vld [vmem:[#allocation3] sm:$0xff]  ;;  %v54_v12 = vld [vmem:[#allocation3 + $0x30] sm:$0xff] }
  0x1e   :  { %46 = vst.msk [vmem:[#allocation2 + $0x20] sm:$0xff] %vm41_vm0, %v268_v1  ;;  %47 = vst.msk [vmem:[#allocation2 + $0x28] sm:$0xff] %vm41_vm0, %v268_v1  ;;  %v55_v13 = vld [vmem:[#allocation3 + $0x38] sm:$0xff]  ;;  %v50_v14 = vld [vmem:[#allocation3 + $0x10] sm:$0xff] }
  0x1f   :  { %v64_v3 = vsub.s32 0, %v63_v2  ;;  %v68_v4 = vsub.s32 1, %v63_v2  ;;  %v51_v15 = vld [vmem:[#allocation3 + $0x18] sm:$0xff]  ;;  %v58_v24 = vld [vmem:[#allocation3 + $0x50] sm:$0xff]  ;;  %v56_v38 = vld [vmem:[#allocation3 + $0x40] sm:$0xff] }
  0x20   :  { %v59_v25 = vld [vmem:[#allocation3 + $0x58] sm:$0xff]  ;;  %v57_v39 = vld [vmem:[#allocation3 + $0x48] sm:$0xff] }
  0x21   :  { %v65_v8 = vrot.slane %v60_v7, %v64_v3  ;;  %v69_v9 = vrot.slane %v60_v7, %v68_v4 }
  0x23   :  { %v76_v16 = vsub.f32 %v52_v5, %v65_v8  ;;  %v77_v17 = vsub.f32 %v53_v6, %v69_v9  ;;  %v72_v18 = vsub.f32 %v48_v10, %v65_v8  ;;  %v73_v19 = vsub.f32 %v49_v11, %v69_v9  ;;  %v86_v56 = vld [vmem:[#allocation2 + $0x10] sm:$0xff]  ;;  %v84_v57 = vld [vmem:[#allocation2] sm:$0xff] }
  0x24   :  { %v78_v20 = vsub.f32 %v54_v12, %v65_v8  ;;  %v79_v21 = vsub.f32 %v55_v13, %v69_v9  ;;  %v74_v22 = vsub.f32 %v50_v14, %v65_v8  ;;  %v75_v23 = vsub.f32 %v51_v15, %v69_v9  ;;  %v87_v62 = vld [vmem:[#allocation2 + $0x18] sm:$0xff]  ;;  %v85_v63 = vld [vmem:[#allocation2 + $0x8] sm:$0xff] }
  0x25   :  { %v94_v26 = vmul.f32 %v76_v16, %v76_v16  ;;  %v95_v27 = vmul.f32 %v77_v17, %v77_v17  ;;  %v90_v28 = vmul.f32 %v72_v18, %v72_v18  ;;  %v91_v29 = vmul.f32 %v73_v19, %v73_v19  ;;  %v89_v4 = vld [vmem:[#allocation2 + $0x28] sm:$0xff]  ;;  %v88_v5 = vld [vmem:[#allocation2 + $0x20] sm:$0xff] }
  0x26   :  { %v96_v30 = vmul.f32 %v78_v20, %v78_v20  ;;  %v97_v31 = vmul.f32 %v79_v21, %v79_v21  ;;  %v92_v32 = vmul.f32 %v74_v22, %v74_v22  ;;  %v93_v33 = vmul.f32 %v75_v23, %v75_v23 }
  0x27   :  { %v111_v34 = vsel %vm102_vm1, %v95_v27, 0.0  ;;  %v103_v35 = vsel %vm102_vm1, %v91_v29, 0.0  ;;  %v82_v36 = vsub.f32 %v58_v24, %v65_v8  ;;  %v83_v37 = vsub.f32 %v59_v25, %v69_v9 }
  0x28   :  { %v112_v40 = vadd.f32 %v111_v34, %v94_v26  ;;  %v104_v41 = vadd.f32 %v103_v35, %v90_v28  ;;  %v115_v42 = vsel %vm102_vm1, %v97_v31, 0.0  ;;  %v107_v43 = vsel %vm102_vm1, %v93_v33, 0.0 }
  0x29   :  { %v116_v44 = vadd.f32 %v115_v42, %v96_v30  ;;  %v108_v45 = vadd.f32 %v107_v43, %v92_v32  ;;  %v101_v46 = vmul.f32 %v83_v37, %v83_v37  ;;  %v100_v47 = vmul.f32 %v82_v36, %v82_v36 }
  0x2a   :  { %113 = vadd.xlane.f32.xlu1 %v112_v40  ;;  %105 = vadd.xlane.f32.xlu0 %v104_v41  ;;  %v80_v48 = vsub.f32 %v56_v38, %v65_v8  ;;  %v81_v49 = vsub.f32 %v57_v39, %v69_v9 }
  0x2b   :  { %v123_v50 = vsel %vm102_vm1, %v101_v46, 0.0 }
  0x2c   :  { %v98_v51 = vmul.f32 %v80_v48, %v80_v48  ;;  %v99_v52 = vmul.f32 %v81_v49, %v81_v49  ;;  %v124_v53 = vadd.f32 %v123_v50, %v100_v47 }
  0x2e   :  { %117 = vadd.xlane.f32.xlu1 %v116_v44  ;;  %109 = vadd.xlane.f32.xlu0 %v108_v45  ;;  %v119_v54 = vsel %vm102_vm1, %v99_v52, 0.0 }
  0x2f   :  { %v120_v55 = vadd.f32 %v119_v54, %v98_v51 }
  0x32   :  { %125 = vadd.xlane.f32.xlu1 %v124_v53  ;;  %121 = vadd.xlane.f32.xlu0 %v120_v55 }
  0xb3   :  { %v114_v58 = vpop.xlane.xlu1 %113  ;;  %v106_v59 = vpop.xlane.xlu0 %105 }
  0xb4   :  { %v129_v60 = vadd.f32 %v114_v58, %v86_v56  ;;  %v127_v61 = vadd.f32 %v106_v59, %v84_v57 }
  0xb6   :  { %136 = vst.msk [vmem:[#allocation2 + $0x10] sm:$0xff] %vm41_vm0, %v129_v60  ;;  %134 = vst.msk [vmem:[#allocation2] sm:$0xff] %vm41_vm0, %v127_v61 }
  0xb7   :  { %v118_v0 = vpop.xlane.xlu1 %117  ;;  %v110_v1 = vpop.xlane.xlu0 %109 }
  0xb8   :  { %v130_v2 = vadd.f32 %v118_v0, %v87_v62  ;;  %v128_v3 = vadd.f32 %v110_v1, %v85_v63 }
  0xba   :  { %137 = vst.msk [vmem:[#allocation2 + $0x18] sm:$0xff] %vm41_vm0, %v130_v2  ;;  %135 = vst.msk [vmem:[#allocation2 + $0x8] sm:$0xff] %vm41_vm0, %v128_v3 }
  0xbb   :  { %v126_v6 = vpop.xlane.xlu1 %125  ;;  %v122_v7 = vpop.xlane.xlu0 %121 }
  0xbc   :  { %v132_v8 = vadd.f32 %v126_v6, %v89_v4  ;;  %v131_v9 = vadd.f32 %v122_v7, %v88_v5 }
  0xbd   :  { %v145_v10 = vld [vmem:[#allocation2 + $0x10] sm:$0xff]  ;;  %v143_v11 = vld [vmem:[#allocation2] sm:$0xff] }
  0xbe   :  { %208 = vrsqrt.f32 %v145_v10  ;;  %139 = vst.msk [vmem:[#allocation2 + $0x28] sm:$0xff] %vm41_vm0, %v132_v8  ;;  %138 = vst.msk [vmem:[#allocation2 + $0x20] sm:$0xff] %vm41_vm0, %v131_v9  ;;  %vm165_vm2 = vcmp.eq.f32.partialorder %v145_v10, inf  ;;  %v168_v19 = vand.u32 2147483648, %v145_v10  ;;  %vm167_vm3 = vcmp.eq.f32.partialorder %v145_v10, 0.0 }
  0xbf   :  { %210 = vrsqrt.f32 %v143_v11  ;;  %vm151_vm4 = vcmp.eq.f32.partialorder %v143_v11, inf  ;;  %v154_v22 = vand.u32 2147483648, %v143_v11  ;;  %vm153_vm5 = vcmp.eq.f32.partialorder %v143_v11, 0.0 }
  0xc1   :  { %v146_v12 = vld [vmem:[#allocation2 + $0x18] sm:$0xff]  ;;  %v144_v13 = vld [vmem:[#allocation2 + $0x8] sm:$0xff] }
  0xc2   :  { %212 = vrsqrt.f32 %v146_v12  ;;  %vm172_vm6 = vcmp.eq.f32.partialorder %v146_v12, inf  ;;  %v175_v29 = vand.u32 2147483648, %v146_v12  ;;  %vm174_vm7 = vcmp.eq.f32.partialorder %v146_v12, 0.0 }
  0xc3   :  { %214 = vrsqrt.f32 %v144_v13  ;;  %vm158_vm8 = vcmp.eq.f32.partialorder %v144_v13, inf  ;;  %v161_v32 = vand.u32 2147483648, %v144_v13  ;;  %vm160_vm9 = vcmp.eq.f32.partialorder %v144_v13, 0.0 }
  0xc5   :  { %v148_v14 = vld [vmem:[#allocation2 + $0x28] sm:$0xff]  ;;  %v147_v15 = vld [vmem:[#allocation2 + $0x20] sm:$0xff] }
  0xc6   :  { %216 = vrsqrt.f32 %v148_v14  ;;  %vm186_vm10 = vcmp.eq.f32.partialorder %v148_v14, inf  ;;  %v189_v39 = vand.u32 2147483648, %v148_v14  ;;  %vm188_vm11 = vcmp.eq.f32.partialorder %v148_v14, 0.0 }
  0xc7   :  { %218 = vrsqrt.f32 %v147_v15  ;;  %vm179_vm12 = vcmp.eq.f32.partialorder %v147_v15, inf  ;;  %v182_v42 = vand.u32 2147483648, %v147_v15  ;;  %vm181_vm13 = vcmp.eq.f32.partialorder %v147_v15, 0.0 }
  0xcb   :  { %v209_v16 = vpop.eup %208 }
  0xcc   :  { %v211_v17 = vpop.eup %210  ;;  %v164_v18 = vmul.f32 %v209_v16, %v145_v10 }
  0xcd   :  { %v150_v20 = vmul.f32 %v211_v17, %v143_v11 }
  0xce   :  { %v166_v21 = vsel %vm165_vm2, %v145_v10, %v164_v18 }
  0xcf   :  { %v213_v23 = vpop.eup %212  ;;  %v169_v24 = vsel %vm167_vm3, %v168_v19, %v166_v21  ;;  %v152_v25 = vsel %vm151_vm4, %v143_v11, %v150_v20 }
  0xd0   :  { %v215_v26 = vpop.eup %214  ;;  %193 = vst.msk [vmem:[%s334_s2 + $0x10] sm:$0xff] %vm41_vm0, %v169_v24  ;;  %v155_v27 = vsel %vm153_vm5, %v154_v22, %v152_v25  ;;  %v171_v28 = vmul.f32 %v213_v23, %v146_v12 }
  0xd1   :  { %191 = vst.msk [vmem:[%s334_s2] sm:$0xff] %vm41_vm0, %v155_v27  ;;  %v157_v30 = vmul.f32 %v215_v26, %v144_v13 }
  0xd2   :  { %v173_v31 = vsel %vm172_vm6, %v146_v12, %v171_v28 }
  0xd3   :  { %v217_v33 = vpop.eup %216  ;;  %v176_v34 = vsel %vm174_vm7, %v175_v29, %v173_v31  ;;  %v159_v35 = vsel %vm158_vm8, %v144_v13, %v157_v30 }
  0xd4   :  { %v219_v36 = vpop.eup %218  ;;  %194 = vst.msk [vmem:[%s334_s2 + $0x18] sm:$0xff] %vm41_vm0, %v176_v34  ;;  %v162_v37 = vsel %vm160_vm9, %v161_v32, %v159_v35  ;;  %v185_v38 = vmul.f32 %v217_v33, %v148_v14 }
  0xd5   :  { %192 = vst.msk [vmem:[%s334_s2 + $0x8] sm:$0xff] %vm41_vm0, %v162_v37  ;;  %v178_v40 = vmul.f32 %v219_v36, %v147_v15 }
  0xd6   :  { %v187_v41 = vsel %vm186_vm10, %v148_v14, %v185_v38 }
  0xd7   :  { %v190_v43 = vsel %vm188_vm11, %v189_v39, %v187_v41  ;;  %v180_v44 = vsel %vm179_vm12, %v147_v15, %v178_v40 }
  0xd8   :  { %196 = vst.msk [vmem:[%s334_s2 + $0x28] sm:$0xff] %vm41_vm0, %v190_v43  ;;  %v183_v45 = vsel %vm181_vm13, %v182_v42, %v180_v44 }
  0xd9   :  { %195 = vst.msk [vmem:[%s334_s2 + $0x20] sm:$0xff] %vm41_vm0, %v183_v45 }
  0xda   :  { %201 = vsyncpa [#allocation4], 1 }
  0xdb   :  { %202 = vsyncpa [#allocation6], 1 }

</bundles_post_ra>
